<compile_context>
chip_gen: v7x
topology: tpu7x:2x2x1
jax: 0.10.0
libtpu: 0.0.40
codegen_flags: <defaults>
</compile_context>

<pallas_src>
import functools

import jax
import jax.numpy as jnp
import numpy as np
from jax import lax
from jax.experimental import pallas as pl
from jax.experimental.pallas import tpu as pltpu

_LANE = 128
_MIB = 1024 * 1024
# C at or above this -> native (B, L, C) layout (no wrapper transposes).
_NATIVE_MIN_C = 64
# kernel_size above this -> prefix-sum window instead of unrolled taps.
_MAX_TAP_KERNEL = 15


def _cdiv(a, b):
    return -(-a // b)


# ---------------------------------------------------------------------------
# Kernel body: operates on a 2-D (L, W) block, time on sublanes, W independent
# lanes (either a channel tile or a folded batch*channel tile).
# ---------------------------------------------------------------------------
def _moving_mean_2d(xf, kernel_size):
    """Edge-replicated moving average along axis 0 of an (L, W) f32 block."""
    L, W = xf.shape
    pad = (kernel_size - 1) // 2
    if pad == 0:
        return xf
    x0 = xf[0:1, :]
    xL = xf[L - 1:L, :]

    if kernel_size <= _MAX_TAP_KERNEL and pad < L:
        # Unrolled clamped taps: acc[t] = sum_j x[clamp(t+j, 0, L-1)].
        acc = xf
        for s in range(1, pad + 1):
            down = jnp.concatenate(
                [jnp.broadcast_to(x0, (s, W)), xf[:L - s, :]], axis=0)  # x[max(t-s,0)]
            up = jnp.concatenate(
                [xf[s:, :], jnp.broadcast_to(xL, (s, W))], axis=0)      # x[min(t+s,L-1)]
            acc = acc + down + up
        return acc * (1.0 / kernel_size)

    # Prefix-sum (Hillis-Steele) path: O(log L) work independent of kernel_size.
    csum = xf
    s = 1
    while s < L:
        shifted = jnp.concatenate(
            [jnp.zeros((s, W), jnp.float32), csum[:L - s, :]], axis=0)
        csum = csum + shifted
        s *= 2
    # interior sum = csum[min(t+pad, L-1)] - csum[t-pad-1] (csum[-1] := 0)
    if pad >= L:
        hi_c = jnp.broadcast_to(csum[L - 1:L, :], (L, W))
    else:
        hi_c = jnp.concatenate(
            [csum[pad:, :], jnp.broadcast_to(csum[L - 1:L, :], (pad, W))], axis=0)
    if pad + 1 >= L:
        lo_c = jnp.zeros((L, W), jnp.float32)
    else:
        lo_c = jnp.concatenate(
            [jnp.zeros((pad + 1, W), jnp.float32), csum[:L - pad - 1, :]], axis=0)
    t_idx = lax.broadcasted_iota(jnp.int32, (L, W), 0)
    n_lo = jnp.maximum(pad - t_idx, 0).astype(jnp.float32)           # clamped-to-0 taps
    n_hi = jnp.maximum(t_idx - (L - 1 - pad), 0).astype(jnp.float32)  # clamped-to-L-1 taps
    winsum = hi_c - lo_c + n_lo * x0 + n_hi * xL
    return winsum * (1.0 / kernel_size)


def _decomp_kernel(x_ref, res_ref, mean_ref, *, kernel_size: int):
    # Hoisted dtype promotion: one cast pass, f32 accumulation regardless of I/O dtype.
    xf = x_ref[...].astype(jnp.float32)
    mean = _moving_mean_2d(xf, kernel_size)
    res = xf - mean
    mean_ref[...] = mean.astype(mean_ref.dtype)
    res_ref[...] = res.astype(res_ref.dtype)


# ---------------------------------------------------------------------------
# Tiling / VMEM policy
# ---------------------------------------------------------------------------
def _physical_vmem_bytes():
    try:
        info = pltpu.get_tpu_info()
        return int(getattr(info, "vmem_capacity_bytes", 64 * _MIB))
    except Exception:
        return 64 * _MIB  # conservative (v7x-sized) fallback


def _pipeline_vmem_need(L, t, itemsize):
    # 2 pipeline buffers x (1 input + 2 outputs) in I/O dtype, plus ~10 f32
    # temporaries (xf, csum/acc, shifted copies, mean, res, iota, ...), plus margin.
    return 2 * 3 * L * t * itemsize + 10 * L * t * 4 + 2 * _MIB


def _choose_lane_tile(lane_extent, L, slab_budget_bytes, other_steps):
    """Lane tile: full extent if <=128, else multiple of 128 capped by a byte budget."""
    if lane_extent <= _LANE:
        return lane_extent  # full-extent block (exempt from the 128 constraint)
    cap = (slab_budget_bytes // 4) // max(L, 1)          # f32 slab byte budget -> lanes
    cap = max(_LANE, (cap // _LANE) * _LANE)
    t = min(cap, (lane_extent // _LANE) * _LANE)
    # Guarantee >=2 total grid steps when possible so v7x's two TensorCores both work.
    if other_steps * _cdiv(lane_extent, t) < 2:
        half = _cdiv(lane_extent, 2)
        half = max(_LANE, _cdiv(half, _LANE) * _LANE)
        t = min(t, half)
    # TODO(synk): for extremely long L (L*128*4B >> budget) also tile L with a
    # pad-sized halo (overlapping index_map); full-L blocks cover typical lengths.
    return max(_LANE, t)


def _shrink_for_vmem(t, L, itemsize, vmem_cap):
    while t > _LANE and _pipeline_vmem_need(L, t, itemsize) > vmem_cap:
        t = max(_LANE, ((t // 2) // _LANE) * _LANE)
    return t


# ---------------------------------------------------------------------------
# Public entry point
# ---------------------------------------------------------------------------
def series_decomp(x: jax.Array, kernel_size: int):
    """Pallas implementation of series_decomp.forward. Returns (res, moving_mean)."""
    if kernel_size < 1 or kernel_size % 2 == 0:
        raise ValueError("series_decomp requires an odd kernel_size >= 1 "
                         f"(got {kernel_size}); even sizes are ill-defined in the "
                         "reference PyTorch module.")
    B, L, C = x.shape
    itemsize = jnp.dtype(x.dtype).itemsize

    phys_vmem = _physical_vmem_bytes()
    vmem_cap = max(int(phys_vmem * 0.75), 16 * _MIB)          # 48 MiB on v7x, 96 MiB on v5e/v6e
    slab_budget = 4 * _MIB if phys_vmem >= 96 * _MIB else 2 * _MIB

    kern = functools.partial(_decomp_kernel, kernel_size=kernel_size)
    cost = pl.CostEstimate(
        flops=B * L * C * (min(kernel_size, _MAX_TAP_KERNEL) + 3),
        transcendentals=0,
        bytes_accessed=3 * B * L * C * itemsize,
    )

    if C >= _NATIVE_MIN_C:
        # Native layout: zero wrapper transposes, exactly 3 HBM passes.
        tc = _choose_lane_tile(C, L, slab_budget, other_steps=B)
        tc = _shrink_for_vmem(tc, L, itemsize, vmem_cap)
        vmem_limit = min(max(_pipeline_vmem_need(L, tc, itemsize), 16 * _MIB), vmem_cap)
        grid = (B, _cdiv(C, tc))
        # Ragged trailing C tile (C % 128 != 0) relies on Pallas OOB-padded reads /
        # dropped OOB writes; lanes are independent so the window sum stays correct.
        res, mean = pl.pallas_call(
            kern,
            out_shape=(
                jax.ShapeDtypeStruct((B, L, C), x.dtype),
                jax.ShapeDtypeStruct((B, L, C), x.dtype),
            ),
            grid=grid,
            in_specs=[pl.BlockSpec((None, L, tc), lambda b, c: (b, 0, c))],
            out_specs=(
                pl.BlockSpec((None, L, tc), lambda b, c: (b, 0, c)),
                pl.BlockSpec((None, L, tc), lambda b, c: (b, 0, c)),
            ),
            compiler_params=pltpu.CompilerParams(
                dimension_semantics=("parallel", "parallel"),
                vmem_limit_bytes=vmem_limit,
            ),
            cost_estimate=cost,
        )(x)
        return res, mean

    # Small-C path: fold (B, L, C) -> (L, B*C) so the lane axis is dense.  The
    # wrapper transposes cost extra HBM passes, but for tiny C the native layout
    # would leave the VPU at <50% lane utilisation and lose more than that.
    # TODO(synk): replace the wrapper transposes with manual per-batch strided
    # DMAs (memory_space=pl.ANY) to get lane-density at 3 HBM passes for small C.
    N = B * C
    x2 = jnp.transpose(x, (1, 0, 2)).reshape(L, N)

    tn = _choose_lane_tile(N, L, slab_budget, other_steps=1)
    tn = _shrink_for_vmem(tn, L, itemsize, vmem_cap)
    vmem_limit = min(max(_pipeline_vmem_need(L, tn, itemsize), 16 * _MIB), vmem_cap)
    grid = (_cdiv(N, tn),)

    res2, mean2 = pl.pallas_call(
        kern,
        out_shape=(
            jax.ShapeDtypeStruct((L, N), x.dtype),
            jax.ShapeDtypeStruct((L, N), x.dtype),
        ),
        grid=grid,
        in_specs=[pl.BlockSpec((L, tn), lambda i: (0, i))],
        out_specs=(
            pl.BlockSpec((L, tn), lambda i: (0, i)),
            pl.BlockSpec((L, tn), lambda i: (0, i)),
        ),
        compiler_params=pltpu.CompilerParams(
            dimension_semantics=("parallel",),
            vmem_limit_bytes=vmem_limit,
        ),
        cost_estimate=cost,
    )(x2)

    res = jnp.transpose(res2.reshape(L, B, C), (1, 0, 2))
    mean = jnp.transpose(mean2.reshape(L, B, C), (1, 0, 2))
    return res, mean


# ---------------------------------------------------------------------------
# Pure-JAX reference (mirrors the PyTorch semantics, odd kernel_size)
# ---------------------------------------------------------------------------
def _series_decomp_ref(x: jax.Array, kernel_size: int):
    pad = (kernel_size - 1) // 2
    front = jnp.repeat(x[:, 0:1, :], pad, axis=1)
    end = jnp.repeat(x[:, -1:, :], pad, axis=1)
    xp = jnp.concatenate([front, x, end], axis=1)           # (B, L+2p, C)
    L = x.shape[1]
    windows = jnp.stack([xp[:, j:j + L, :] for j in range(kernel_size)], axis=0)
    mean = jnp.mean(windows, axis=0)
    return x - mean, mean


if __name__ == "__main__":
    key = jax.random.PRNGKey(0)
    keys = jax.random.split(key, 4)

    # (shape, kernel_size) cases exercising all code paths:
    #  1. tiny C  -> folded lane-dense path, single full-extent tile, tap window
    #  2. small C -> folded path, lane-tiled grid with a ragged trailing tile
    #  3. C>=128  -> native (B,L,C) path, prefix-sum window (large kernel_size)
    #  4. C>128   -> native path, ragged trailing C tile, tap window
    cases = [
        ((2, 16, 8), 5),
        ((4, 24, 40), 5),
        ((2, 32, 128), 25),
        ((2, 16, 192), 5),
    ]

    for (shape, ksize), k in zip(cases, keys):
        x = jax.random.normal(k, shape, dtype=jnp.float32)
        res, mean = series_decomp(x, ksize)
        res = jax.block_until_ready(res)
        mean = jax.block_until_ready(mean)
        res_ref, mean_ref = _series_decomp_ref(x, ksize)
        np.testing.assert_allclose(np.asarray(mean), np.asarray(mean_ref),
                                   rtol=1e-5, atol=1e-5)
        np.testing.assert_allclose(np.asarray(res), np.asarray(res_ref),
                                   rtol=1e-5, atol=1e-5)

    print("KERNEL_OK")
</pallas_src>

<mosaic_0001>
module attributes {stable_mosaic.version = 11 : i64} {
  func.func @_decomp_kernel(%arg0: i32, %arg1: memref<16x16xf32, #tpu.memory_space<vmem>>, %arg2: memref<16x16xf32, #tpu.memory_space<vmem>>, %arg3: memref<16x16xf32, #tpu.memory_space<vmem>>) attributes {dimension_semantics = [#tpu.dimension_semantics<parallel>], iteration_bounds = array<i64: 1>, scalar_prefetch = 0 : i64, scratch_operands = 0 : i64, tpu.core_type = #tpu.core_type<tc>, window_params = [{transform_indices = @transform_0, window_bounds = array<i64: 16, 16>}, {transform_indices = @transform_1, window_bounds = array<i64: 16, 16>}, {transform_indices = @transform_2, window_bounds = array<i64: 16, 16>}]} {
    %c0 = arith.constant 0 : index
    %c0_0 = arith.constant 0 : index
    %0 = vector.load %arg1[%c0, %c0_0] : memref<16x16xf32, #tpu.memory_space<vmem>>, vector<16x16xf32>
    %1 = vector.extract_strided_slice %0 {offsets = [0, 0], sizes = [1, 16], strides = [1, 1]} : vector<16x16xf32> to vector<1x16xf32>
    %2 = vector.extract_strided_slice %0 {offsets = [15, 0], sizes = [1, 16], strides = [1, 1]} : vector<16x16xf32> to vector<1x16xf32>
    %3 = vector.extract_strided_slice %0 {offsets = [0, 0], sizes = [15, 16], strides = [1, 1]} : vector<16x16xf32> to vector<15x16xf32>
    %4 = tpu.concatenate %1, %3 in 0 : vector<1x16xf32>, vector<15x16xf32> -> vector<16x16xf32>
    %5 = vector.extract_strided_slice %0 {offsets = [1, 0], sizes = [15, 16], strides = [1, 1]} : vector<16x16xf32> to vector<15x16xf32>
    %6 = tpu.concatenate %5, %2 in 0 : vector<15x16xf32>, vector<1x16xf32> -> vector<16x16xf32>
    %7 = arith.addf %0, %4 : vector<16x16xf32>
    %8 = arith.addf %7, %6 : vector<16x16xf32>
    %9 = vector.shape_cast %1 : vector<1x16xf32> to vector<1x16xf32>
    %10 = vector.broadcast %9 : vector<1x16xf32> to vector<2x16xf32>
    %11 = vector.extract_strided_slice %0 {offsets = [0, 0], sizes = [14, 16], strides = [1, 1]} : vector<16x16xf32> to vector<14x16xf32>
    %12 = tpu.concatenate %10, %11 in 0 : vector<2x16xf32>, vector<14x16xf32> -> vector<16x16xf32>
    %13 = vector.extract_strided_slice %0 {offsets = [2, 0], sizes = [14, 16], strides = [1, 1]} : vector<16x16xf32> to vector<14x16xf32>
    %14 = vector.shape_cast %2 : vector<1x16xf32> to vector<1x16xf32>
    %15 = vector.broadcast %14 : vector<1x16xf32> to vector<2x16xf32>
    %16 = tpu.concatenate %13, %15 in 0 : vector<14x16xf32>, vector<2x16xf32> -> vector<16x16xf32>
    %17 = arith.addf %8, %12 : vector<16x16xf32>
    %18 = arith.addf %17, %16 : vector<16x16xf32>
    %cst = arith.constant 2.000000e-01 : f32
    %19 = vector.broadcast %cst : f32 to vector<16x16xf32>
    %20 = arith.mulf %18, %19 : vector<16x16xf32>
    %21 = arith.subf %0, %20 : vector<16x16xf32>
    %c0_1 = arith.constant 0 : index
    %c0_2 = arith.constant 0 : index
    %22 = vector.load %arg3[%c0_1, %c0_2] : memref<16x16xf32, #tpu.memory_space<vmem>>, vector<16x16xf32>
    tpu.vector_store %arg3[%c0_1, %c0_2], %20 {strides = array<i32>} : memref<16x16xf32, #tpu.memory_space<vmem>>, vector<16x16xf32>,
    %c0_3 = arith.constant 0 : index
    %c0_4 = arith.constant 0 : index
    %23 = vector.load %arg2[%c0_3, %c0_4] : memref<16x16xf32, #tpu.memory_space<vmem>>, vector<16x16xf32>
    tpu.vector_store %arg2[%c0_3, %c0_4], %21 {strides = array<i32>} : memref<16x16xf32, #tpu.memory_space<vmem>>, vector<16x16xf32>,
    return
  }
  func.func @transform_0(%arg0: i32) -> (i32, i32) {
    %c0_i32 = arith.constant 0 : i32
    %c0_i32_0 = arith.constant 0 : i32
    return %c0_i32, %arg0 : i32, i32
  }
  func.func @transform_1(%arg0: i32) -> (i32, i32) {
    %c0_i32 = arith.constant 0 : i32
    %c0_i32_0 = arith.constant 0 : i32
    return %c0_i32, %arg0 : i32, i32
  }
  func.func @transform_2(%arg0: i32) -> (i32, i32) {
    %c0_i32 = arith.constant 0 : i32
    %c0_i32_0 = arith.constant 0 : i32
    return %c0_i32, %arg0 : i32, i32
  }
}

</mosaic_0001>

<bundles_post_ra>
// kernel: tpu_custom_call.1
= control target key start
LH: loop header
LB: loop body
LE: loop exit
PB: predicated region body
PF: predicated region fallthrough
CT: control target
= control target key end

     0   :  { %8 = vsyncpa [#allocation3], 0  ;;  %s275_s0 = inlined_call_operand.hbm [shape: f32[16,16], index: 0, kind: input, shape index: {}]   ;;  %s276_s1 = inlined_call_operand.hbm [shape: f32[16,16], index: 1, kind: output, shape index: {0}]   ;;  %s277_s2 = inlined_call_operand.hbm [shape: f32[16,16], index: 2, kind: output, shape index: {1}]  }
   0x1   :  { %9 = vsyncpa [#allocation4], 0 }
   0x2   :  { %10 = vsyncpa [#allocation7], 0  ;;  %s193_s9 = smov [#allocation2]   ;;  %s121_s13 = scalar_lea.hbm %s275_s0, 256 }
   0x3   :  { %s16_s10 = sshll.u32 %s193_s9, 4  ;;  %p122_p0 = scmp.ne.s32.totalorder %s275_s0, %s121_s13  ;;  %s17_s10 = int_to_ptr.vmem [resolvable:$true] %s16_s10 }
   0x4   :  { %p125_p1 = scmp.lt.u32.totalorder %s121_s13, %s275_s0 }
   0x6   :  { %p127_p2 = pnand %p125_p1, %p122_p0 }
   0x8   :  { %130 = shalt.err (!%p127_p2)
}
   0x9   :  { %s131_s18 = scalar_lea.vmem %s17_s10, 256  ;;  %p136_p4 = scmp.lt.s32.totalorder %s17_s10, %s17_s10 }
   0xa   :  { %p132_p3 = scmp.ne.s32.totalorder %s17_s10, %s131_s18  ;;  %p137_p5 = scmp.lt.s32.totalorder %s131_s18, %s131_s18 }
   0xc   :  { %p138_p6 = por %p137_p5, %p136_p4 }
   0xe   :  { %p139_p7 = pnand %p138_p6, %p132_p3 }
  0x10   :  { %142 = shalt.err (!%p139_p7)
}
  0x11   :  { %s194_s19 = smov 128   ;;  %s195_s20 = smov 8  }
  0x12   :  { %22 = dma.hbm_to_vmem [thread:$0]  %s275_s0, 256, %s17_s10, [#allocation3], %s194_s19, %s194_s19, %s195_s20  }
  0x13   :  { %187 = dma.done.wait [#allocation3], 256  }
  0x14   :  { %188 = vsyncadd [#allocation3], 4294967040  ;;  %v48_v0 = vlaneseq  ;;  %v26_v3 = vld [vmem:[#allocation2] sm:$0xff]  ;;  %v27_v4 = vld [vmem:[#allocation2 + $0x8] sm:$0xff]  ;;  %vm30_vm0 = vcmask 1040384   ;;  %vm37_vm1 = vcmask 1046528  }
  0x15   :  { %v31_v6 = vrot.slane %v26_v3, 7  ;;  %v38_v7 = vrot.slane %v26_v3, 1  ;;  %v39_v8 = vrot.slane %v27_v4, 1  ;;  %vm52_vm2 = vcmask 1041408   ;;  %s196_s0 = smov [#allocation6]   ;;  %s197_s24 = smov [#allocation5]  }
  0x16   :  { %v49_v1 = vshrl.u32 %v48_v0, 7  ;;  %v53_v10 = vrot.slane %v26_v3, 6  ;;  %v64_v11 = vrot.slane %v26_v3, 2  ;;  %v32_v12 = vrot.slane %v27_v4, 7  ;;  %s100_s23 = sshll.u32 %s196_s0, 4  ;;  %s88_s25 = sshll.u32 %s197_s24, 4  ;;  %s101_s23 = int_to_ptr.vmem [resolvable:$true] %s100_s23  ;;  %s236_s25 = int_to_ptr.vmem [resolvable:$true] %s88_s25 }
  0x17   :  { %v36_v13 = vsel %vm30_vm0, %v26_v3, %v31_v6  ;;  %v40_v14 = vsel %vm37_vm1, %v38_v7, %v39_v8  ;;  %v65_v15 = vrot.slane %v27_v4, 2  ;;  %v54_v16 = vrot.slane %v27_v4, 6  ;;  %s143_s26 = scalar_lea.vmem %s101_s23, 256  ;;  %p148_p9 = scmp.lt.s32.totalorder %s101_s23, %s101_s23 }
  0x18   :  { %v50_v2 = vsub.s32 0, %v49_v1  ;;  %v61_v5 = vsub.s32 7, %v49_v1  ;;  %v44_v17 = vadd.f32 %v36_v13, %v26_v3  ;;  %vm63_vm3 = vcmask 1045504   ;;  %p144_p8 = scmp.ne.s32.totalorder %s101_s23, %s143_s26  ;;  %p149_p10 = scmp.lt.s32.totalorder %s143_s26, %s143_s26 }
  0x19   :  { %v33_v18 = vsel %vm30_vm0, %v31_v6, %v32_v12  ;;  %v43_v19 = vsel %vm37_vm1, %v39_v8, %v27_v4  ;;  %v55_v24 = vsel %vm52_vm2, %v53_v10, %v54_v16  ;;  %v66_v25 = vsel %vm63_vm3, %v64_v11, %v65_v15 }
  0x1a   :  { %v51_v9 = vrot.slane %v26_v3, %v50_v2  ;;  %v45_v21 = vadd.f32 %v33_v18, %v27_v4  ;;  %v62_v22 = vrot.slane %v27_v4, %v61_v5  ;;  %v46_v23 = vadd.f32 %v44_v17, %v40_v14  ;;  %p150_p11 = por %p149_p10, %p148_p9 }
  0x1b   :  { %vm78_vm4 = vcmask 130048  }
  0x1c   :  { %v58_v20 = vsel %vm52_vm2, %v51_v9, %v53_v10  ;;  %v47_v26 = vadd.f32 %v45_v21, %v43_v19  ;;  %v69_v28 = vsel %vm63_vm3, %v65_v15, %v62_v22  ;;  %p151_p12 = pnand %p150_p11, %p144_p8 }
  0x1d   :  { %v70_v27 = vadd.f32 %v58_v20, %v46_v23 }
  0x1e   :  { %v71_v29 = vadd.f32 %v55_v24, %v47_v26 }
  0x1f   :  { %v72_v30 = vadd.f32 %v70_v27, %v66_v25 }
  0x20   :  { %v73_v31 = vadd.f32 %v71_v29, %v69_v28 }
  0x21   :  { %v74_v32 = vmul.f32 0.2, %v72_v30 }
  0x22   :  { %v75_v33 = vmul.f32 0.2, %v73_v31 }
  0x23   :  { %79 = vst.msk [vmem:[#allocation6] sm:$0xff] %vm78_vm4, %v74_v32  ;;  %v76_v34 = vsub.f32 %v26_v3, %v74_v32 }
  0x24   :  { %80 = vst.msk [vmem:[#allocation6 + $0x8] sm:$0xff] %vm78_vm4, %v75_v33  ;;  %v77_v35 = vsub.f32 %v27_v4, %v75_v33 }
  0x25   :  { %81 = vst.msk [vmem:[#allocation5] sm:$0xff] %vm78_vm4, %v76_v34 }
  0x26   :  { %154 = shalt.err (!%p151_p12)
}
  0x27   :  { %s155_s29 = scalar_lea.hbm %s277_s2, 256 }
  0x28   :  { %p156_p13 = scmp.ne.s32.totalorder %s277_s2, %s155_s29  ;;  %p159_p0 = scmp.lt.u32.totalorder %s155_s29, %s277_s2 }
  0x2a   :  { %p161_p1 = pnand %p159_p0, %p156_p13 }
  0x2c   :  { %164 = shalt.err (!%p161_p1)
}
  0x2d   :  { %106 = dma.vmem_to_hbm [thread:$0]  %s101_s23, 256, %s277_s2, [#allocation7], %s194_s19, %s194_s19, %s195_s20   ;;  %82 = vst.msk [vmem:[#allocation5 + $0x8] sm:$0xff] %vm78_vm4, %v77_v35 }
  0x2e   :  { %s165_s8 = scalar_lea.vmem %s236_s25, 256  ;;  %p170_p3 = scmp.lt.s32.totalorder %s236_s25, %s236_s25 }
  0x2f   :  { %p166_p2 = scmp.ne.s32.totalorder %s236_s25, %s165_s8  ;;  %p171_p4 = scmp.lt.s32.totalorder %s165_s8, %s165_s8 }
  0x31   :  { %p172_p5 = por %p171_p4, %p170_p3 }
  0x33   :  { %p173_p6 = pnand %p172_p5, %p166_p2 }
  0x35   :  { %176 = shalt.err (!%p173_p6)
}
  0x36   :  { %s177_s11 = scalar_lea.hbm %s276_s1, 256 }
  0x37   :  { %p178_p7 = scmp.ne.s32.totalorder %s276_s1, %s177_s11  ;;  %p181_p8 = scmp.lt.u32.totalorder %s177_s11, %s276_s1 }
  0x39   :  { %p183_p9 = pnand %p181_p8, %p178_p7 }
  0x3b   :  { %186 = shalt.err (!%p183_p9)
}
  0x3c   :  { %94 = dma.vmem_to_hbm [thread:$0]  %s236_s25, 256, %s276_s1, [#allocation4], %s194_s19, %s194_s19, %s195_s20  }
  0x3d   :  { %189 = dma.done.wait [#allocation4], 256  }
  0x3e   :  { %190 = vsyncadd [#allocation4], 4294967040 }
  0x3f   :  { %191 = dma.done.wait [#allocation7], 256  }
  0x40   :  { %192 = vsyncadd [#allocation7], 4294967040 }
  0x41   :  { %113 = vsyncpa [#allocation3], 1 }
  0x42   :  { %114 = vsyncpa [#allocation4], 1 }
  0x43   :  { %115 = vsyncpa [#allocation7], 1 }

</bundles_post_ra>
